<compile_context>
chip_gen: v6e
topology: v6e:2x2x1
jax: 0.10.0
libtpu: 0.0.40
codegen_flags: <defaults>
</compile_context>

<pallas_src>
import functools

import jax
import jax.numpy as jnp
from jax.experimental import pallas as pl
from jax.experimental.pallas import tpu as pltpu

LN_EPS = 1e-5  # PyTorch nn.LayerNorm default


def _round_up(x, m):
    return (x + m - 1) // m * m


def _vmem_limit_bytes():
    """Chip VMEM capacity minus headroom for compiler scratch / temporaries."""
    cap = 128 * 1024 * 1024
    try:
        cap = int(pltpu.get_tpu_info().vmem_capacity_bytes)
    except Exception:  # conservative fallback if the query is unavailable
        pass
    # v5e/v6e (128 MiB) -> 112 MiB, v7x (64 MiB per TC) -> 48 MiB.
    return max(32 * 1024 * 1024, cap - 16 * 1024 * 1024)


def _sublayer_kernel(x_ref, w_ref, b_ref, o_ref, *, d_valid, tn, matmul_dtype):
    """One (tm, tn) output tile:

        out[:, cols] = x[:, cols] + (LayerNorm(x) @ W_eff[:, cols] + b_eff[cols])

    gamma/beta are pre-folded into W_eff/b_eff by the wrapper, so LN here is the
    plain (x - mean) * rsqrt(var + eps) normalization.  Padded x lanes are zero
    and padded W_eff rows/cols (and b_eff entries) are zero, so no masking is
    needed: plain sums scaled by 1/d_valid give valid-lane statistics and the
    padded contributions to the matmul / residual vanish.

    NOTE: rows are NOT padded; the ragged last row tile may contain garbage
    rows whose outputs Pallas never stores.  This relies on every row being
    independent (true for LN + Linear + residual); revisit if the sublayer
    ever mixes rows.
    """
    x = x_ref[...].astype(jnp.float32)                       # (tm, d_pad)
    inv_d = 1.0 / d_valid
    mean = jnp.sum(x, axis=-1, keepdims=True) * inv_d        # (tm, 1)
    var = jnp.sum(x * x, axis=-1, keepdims=True) * inv_d - mean * mean
    y = ((x - mean) * jax.lax.rsqrt(var + LN_EPS)).astype(matmul_dtype)

    # Sublayer: Linear(D, D) column slab on the MXU, f32 accumulation + f32 bias.
    sub = jnp.dot(y, w_ref[...], preferred_element_type=jnp.float32)
    sub = sub + b_ref[...]

    # Residual add against this N tile's columns of x (lane-aligned slice).
    col0 = pl.multiple_of(pl.program_id(1) * tn, 128)
    x_res = x_ref[:, pl.ds(col0, tn)].astype(jnp.float32)
    o_ref[...] = (x_res + sub).astype(o_ref.dtype)


def sublayer_logic(rep_batch, gamma, beta, w, b, *, row_tile=512, n_tile=None,
                   matmul_dtype=jnp.bfloat16):
    """rep_batch: (B, S, D); gamma/beta/b: (D,); w: (D, D)."""
    B, S, D = rep_batch.shape
    rows = B * S

    # Fold the LayerNorm affine into the linear sublayer:
    #   (xc*inv*gamma + beta) @ W + b == (xc*inv) @ (gamma[:,None]*W) + (beta@W + b)
    gamma32 = gamma.astype(jnp.float32)
    beta32 = beta.astype(jnp.float32)
    w32 = w.astype(jnp.float32)
    w_eff = gamma32[:, None] * w32
    b_eff = jnp.dot(beta32, w32, precision=jax.lax.Precision.HIGHEST) + b.astype(jnp.float32)

    # Lane padding only when D is not already a multiple of 128 (keeps output
    # stores lane-dense; common dims 512/768/1024/4096 need no wrapper copies).
    d_pad = max(_round_up(D, 128), 128)
    x2d = rep_batch.reshape(rows, D)
    if d_pad != D:
        x2d = jnp.pad(x2d, ((0, 0), (0, d_pad - D)))
        w_eff = jnp.pad(w_eff, ((0, d_pad - D), (0, d_pad - D)))
        b_eff = jnp.pad(b_eff, ((0, d_pad - D),))
    w_eff = w_eff.astype(matmul_dtype)      # bf16 weights -> 2x MXU, half the bytes
    b_eff = b_eff.reshape(1, d_pad)         # f32, added after f32 accumulation

    # N tiling: keep only a (d_pad, tn) column slab of W resident so large DxD
    # weights fit VMEM (v7x has 64 MiB / TC); small D uses a single slab.
    if n_tile is not None:
        tn = n_tile
    elif d_pad <= 2048:
        tn = d_pad
    else:
        tn = 128
        for cand in (1024, 512, 256):
            if d_pad % cand == 0:
                tn = cand
                break
    assert tn % 128 == 0 and d_pad % tn == 0
    n_tiles = d_pad // tn

    # Row tiling: big tiles amortize the ~0.35us/step overhead and feed the MXU;
    # shrink automatically so the ~5 live f32 (tm, d_pad) temporaries plus the
    # double-buffered x/out tiles stay well inside VMEM at large D.
    x_bytes = jnp.dtype(rep_batch.dtype).itemsize
    tm = min(row_tile, _round_up(rows, 8))
    row_budget = 28 * 1024 * 1024

    def _row_tile_bytes(t):
        return (5 * t * d_pad * 4            # f32 temporaries in the kernel body
                + 2 * t * d_pad * x_bytes    # double-buffered x tile
                + 2 * t * tn * x_bytes)      # double-buffered out tile

    while tm > 8 and _row_tile_bytes(tm) > row_budget:
        tm = max(8, _round_up(tm // 2, 8))

    # Grid-invariant weight/bias (single N tile): single-buffer them so the
    # largest VMEM consumer is not pointlessly double-buffered.
    if n_tiles == 1:
        w_spec = pl.BlockSpec((d_pad, tn), lambda i, j: (0, j),
                              pipeline_mode=pl.Buffered(1))
        b_spec = pl.BlockSpec((1, tn), lambda i, j: (0, j),
                              pipeline_mode=pl.Buffered(1))
    else:
        w_spec = pl.BlockSpec((d_pad, tn), lambda i, j: (0, j))
        b_spec = pl.BlockSpec((1, tn), lambda i, j: (0, j))

    kernel = functools.partial(_sublayer_kernel, d_valid=D, tn=tn,
                               matmul_dtype=matmul_dtype)

    out = pl.pallas_call(
        kernel,
        out_shape=jax.ShapeDtypeStruct((rows, d_pad), rep_batch.dtype),
        grid=(pl.cdiv(rows, tm), n_tiles),
        in_specs=[
            pl.BlockSpec((tm, d_pad), lambda i, j: (i, 0)),   # x row slab (j-invariant)
            w_spec,                                           # W_eff column slab
            b_spec,                                           # b_eff column slab
        ],
        out_specs=pl.BlockSpec((tm, tn), lambda i, j: (i, j)),
        compiler_params=pltpu.CompilerParams(
            dimension_semantics=("parallel", "parallel"),
            vmem_limit_bytes=_vmem_limit_bytes(),
        ),
    )(x2d, w_eff, b_eff)

    if d_pad != D:
        out = out[:, :D]
    return out.reshape(B, S, D)


def _reference(rep_batch, gamma, beta, w, b):
    x = rep_batch.astype(jnp.float32)
    mean = jnp.mean(x, axis=-1, keepdims=True)
    var = jnp.mean((x - mean) ** 2, axis=-1, keepdims=True)
    y = (x - mean) * jax.lax.rsqrt(var + LN_EPS) * gamma + beta
    return x + (jnp.dot(y, w, precision=jax.lax.Precision.HIGHEST) + b)


def _make_inputs(key, B, S, D):
    kx, kw, kg, kb = jax.random.split(key, 4)
    rep = jax.random.normal(kx, (B, S, D), dtype=jnp.float32)
    gamma = 1.0 + 0.1 * jax.random.normal(kg, (D,), dtype=jnp.float32)
    beta = 0.1 * jax.random.normal(kb, (D,), dtype=jnp.float32)
    w = jax.random.normal(kw, (D, D), dtype=jnp.float32) * (1.0 / jnp.sqrt(D))
    b = jnp.zeros((D,), dtype=jnp.float32)
    return rep, gamma, beta, w, b


if __name__ == "__main__":
    k1, k2, k3 = jax.random.split(jax.random.PRNGKey(0), 3)

    # Test 1: model_dimension = 32 (lane-padded to 128).  Checks the folded
    # LN + Linear + residual and the padded-lane statistics, in both the f32
    # matmul path (tight tolerance) and the bf16 perf path (loose tolerance).
    rep, gamma, beta, w, b = _make_inputs(k1, 2, 8, 32)
    ref = _reference(rep, gamma, beta, w, b)
    out_f32 = jax.block_until_ready(
        sublayer_logic(rep, gamma, beta, w, b, matmul_dtype=jnp.float32))
    assert jnp.allclose(out_f32, ref, atol=2e-3, rtol=2e-3), "f32 mismatch"
    out_bf16 = jax.block_until_ready(
        sublayer_logic(rep, gamma, beta, w, b))
    assert jnp.allclose(out_bf16, ref, atol=6e-2, rtol=6e-2), "bf16 mismatch"

    # Test 2: ragged last row tile (rows=40, tm=16 -> 3 grid steps, last one
    # partial) — exercises the "no wrapper row padding" path.
    rep, gamma, beta, w, b = _make_inputs(k2, 2, 20, 32)
    ref = _reference(rep, gamma, beta, w, b)
    out = jax.block_until_ready(
        sublayer_logic(rep, gamma, beta, w, b, row_tile=16,
                       matmul_dtype=jnp.float32))
    assert jnp.allclose(out, ref, atol=2e-3, rtol=2e-3), "ragged-rows mismatch"

    # Test 3: N-tiled weight path (D=256, tn=128 -> two resident W column
    # slabs, per-tile residual slicing) — exercises the large-D code path at
    # a small size.
    rep, gamma, beta, w, b = _make_inputs(k3, 2, 8, 256)
    ref = _reference(rep, gamma, beta, w, b)
    out = jax.block_until_ready(
        sublayer_logic(rep, gamma, beta, w, b, n_tile=128,
                       matmul_dtype=jnp.float32))
    assert jnp.allclose(out, ref, atol=2e-3, rtol=2e-3), "n-tile mismatch"

    print("KERNEL_OK")
</pallas_src>

<mosaic_0001>
module attributes {stable_mosaic.version = 11 : i64} {
  func.func @_sublayer_kernel(%arg0: i32, %arg1: i32, %arg2: memref<16x128xf32, #tpu.memory_space<vmem>>, %arg3: memref<128x128xf32, #tpu.memory_space<vmem>>, %arg4: memref<1x128xf32, #tpu.memory_space<vmem>>, %arg5: memref<16x128xf32, #tpu.memory_space<vmem>>) attributes {dimension_semantics = [#tpu.dimension_semantics<parallel>, #tpu.dimension_semantics<parallel>], iteration_bounds = array<i64: 1, 1>, scalar_prefetch = 0 : i64, scratch_operands = 0 : i64, tpu.core_type = #tpu.core_type<tc>, window_params = [{transform_indices = @transform_0, window_bounds = array<i64: 16, 128>}, {pipeline_mode = #tpu.pipeline_mode<synchronous>, transform_indices = @transform_1, window_bounds = array<i64: 128, 128>}, {pipeline_mode = #tpu.pipeline_mode<synchronous>, transform_indices = @transform_2, window_bounds = array<i64: 1, 128>}, {transform_indices = @transform_3, window_bounds = array<i64: 16, 128>}]} {
    %c0 = arith.constant 0 : index
    %c0_0 = arith.constant 0 : index
    %0 = vector.load %arg2[%c0, %c0_0] : memref<16x128xf32, #tpu.memory_space<vmem>>, vector<16x128xf32>
    %cst = arith.constant dense<0.000000e+00> : vector<16xf32>
    %1 = vector.multi_reduction <add>, %0, %cst [1] : vector<16x128xf32> to vector<16xf32>
    %2 = vector.shape_cast %1 : vector<16xf32> to vector<16x1xf32>
    %cst_1 = arith.constant 3.125000e-02 : f32
    %3 = vector.broadcast %cst_1 : f32 to vector<16x1xf32>
    %4 = arith.mulf %2, %3 : vector<16x1xf32>
    %5 = arith.mulf %0, %0 : vector<16x128xf32>
    %cst_2 = arith.constant dense<0.000000e+00> : vector<16xf32>
    %6 = vector.multi_reduction <add>, %5, %cst_2 [1] : vector<16x128xf32> to vector<16xf32>
    %7 = vector.shape_cast %6 : vector<16xf32> to vector<16x1xf32>
    %cst_3 = arith.constant 3.125000e-02 : f32
    %8 = vector.broadcast %cst_3 : f32 to vector<16x1xf32>
    %9 = arith.mulf %7, %8 : vector<16x1xf32>
    %10 = arith.mulf %4, %4 : vector<16x1xf32>
    %11 = arith.subf %9, %10 : vector<16x1xf32>
    %12 = vector.broadcast %4 : vector<16x1xf32> to vector<16x128xf32>
    %13 = arith.subf %0, %12 : vector<16x128xf32>
    %cst_4 = arith.constant 9.99999974E-6 : f32
    %14 = vector.broadcast %cst_4 : f32 to vector<16x1xf32>
    %15 = arith.addf %11, %14 : vector<16x1xf32>
    %16 = math.rsqrt %15 : vector<16x1xf32>
    %17 = vector.broadcast %16 : vector<16x1xf32> to vector<16x128xf32>
    %18 = arith.mulf %13, %17 : vector<16x128xf32>
    %c0_5 = arith.constant 0 : index
    %c0_6 = arith.constant 0 : index
    %19 = vector.load %arg3[%c0_5, %c0_6] : memref<128x128xf32, #tpu.memory_space<vmem>>, vector<128x128xf32>
    %cst_7 = arith.constant dense<0.000000e+00> : vector<16x128xf32>
    %20 = tpu.matmul %18, %19, %cst_7 {dimension_numbers = #tpu.dot_dimension_numbers<[1], [0], [0], [1], [0, 0, 1, 1], [], []>} : vector<16x128xf32>, vector<128x128xf32>, vector<16x128xf32> -> vector<16x128xf32>
    %c0_8 = arith.constant 0 : index
    %c0_9 = arith.constant 0 : index
    %21 = vector.load %arg4[%c0_8, %c0_9] : memref<1x128xf32, #tpu.memory_space<vmem>>, vector<1x128xf32>
    %22 = vector.broadcast %21 : vector<1x128xf32> to vector<16x128xf32>
    %23 = arith.addf %20, %22 : vector<16x128xf32>
    %c128_i32 = arith.constant 128 : i32
    %24 = arith.muli %arg1, %c128_i32 : i32
    %25 = tpu.assume_multiple %24, 128 : i32
    %c0_10 = arith.constant 0 : index
    %26 = arith.index_cast %25 : i32 to index
    %27 = vector.load %arg2[%c0_10, %26] : memref<16x128xf32, #tpu.memory_space<vmem>>, vector<16x128xf32>
    %28 = arith.addf %27, %23 : vector<16x128xf32>
    %c0_11 = arith.constant 0 : index
    %c0_12 = arith.constant 0 : index
    %29 = vector.load %arg5[%c0_11, %c0_12] : memref<16x128xf32, #tpu.memory_space<vmem>>, vector<16x128xf32>
    tpu.vector_store %arg5[%c0_11, %c0_12], %28 {strides = array<i32>} : memref<16x128xf32, #tpu.memory_space<vmem>>, vector<16x128xf32>,
    return
  }
  func.func @transform_0(%arg0: i32, %arg1: i32) -> (i32, i32) {
    %c0_i32 = arith.constant 0 : i32
    %c0_i32_0 = arith.constant 0 : i32
    return %arg0, %c0_i32 : i32, i32
  }
  func.func @transform_1(%arg0: i32, %arg1: i32) -> (i32, i32) {
    %c0_i32 = arith.constant 0 : i32
    %c0_i32_0 = arith.constant 0 : i32
    return %c0_i32, %arg1 : i32, i32
  }
  func.func @transform_2(%arg0: i32, %arg1: i32) -> (i32, i32) {
    %c0_i32 = arith.constant 0 : i32
    %c0_i32_0 = arith.constant 0 : i32
    return %c0_i32, %arg1 : i32, i32
  }
  func.func @transform_3(%arg0: i32, %arg1: i32) -> (i32, i32) {
    %c0_i32 = arith.constant 0 : i32
    return %arg0, %arg1 : i32, i32
  }
}

</mosaic_0001>

<bundles_post_ra>
// kernel: tpu_custom_call.1
= control target key start
LH: loop header
LB: loop body
LE: loop exit
PB: predicated region body
PF: predicated region fallthrough
CT: control target
= control target key end

     0   :  { %8 = vsyncpa [#allocation3], 0  ;;  %s387_s0 = inlined_call_operand.hbm [shape: f32[16,128], index: 0, kind: input, shape index: {}]   ;;  %s388_s1 = inlined_call_operand.hbm [shape: f32[128,128], index: 1, kind: input, shape index: {}]   ;;  %s389_s2 = inlined_call_operand.vmem [shape: f32[1,128], index: 2, kind: input, shape index: {}]   ;;  %s390_s3 = inlined_call_operand.hbm [shape: f32[16,128], index: 3, kind: output, shape index: {}]  }
   0x1   :  { %9 = vsyncpa [#allocation6], 0 }
   0x2   :  { %10 = vsyncpa [#allocation4], 0  ;;  %s327_s12 = smov [#allocation2]  }
   0x3   :  { %s16_s13 = sshll.u32 %s327_s12, 4  ;;  %s17_s13 = int_to_ptr.vmem [resolvable:$true] %s16_s13 }
   0x4   :  { %s269_s14 = scalar_lea.vmem %s17_s13, 256  ;;  %p274_p1 = scmp.lt.s32.totalorder %s17_s13, %s17_s13 }
   0x5   :  { %p270_p0 = scmp.ne.s32.totalorder %s17_s13, %s269_s14  ;;  %p275_p2 = scmp.lt.s32.totalorder %s269_s14, %s269_s14 }
   0x7   :  { %p276_p3 = por %p275_p2, %p274_p1 }
   0x9   :  { %p277_p4 = pnand %p276_p3, %p270_p0 }
   0xb   :  { %280 = shalt.err (!%p277_p4)
}
   0xc   :  { %s328_s15 = smov 128   ;;  %s329_s16 = smov 8  }
   0xd   :  { %22 = dma.hbm_to_vmem [thread:$0]  %s387_s0, 256, %s17_s13, [#allocation3], %s328_s15, %s328_s15, %s329_s16  }
   0xe   :  { %s330_s19 = smov [#allocation5]  }
   0xf   :  { %s28_s20 = sshll.u32 %s330_s19, 4  ;;  %s29_s20 = int_to_ptr.vmem [resolvable:$true] %s28_s20 }
  0x10   :  { %s289_s21 = scalar_lea.vmem %s29_s20, 2048  ;;  %p294_p6 = scmp.lt.s32.totalorder %s29_s20, %s29_s20 }
  0x11   :  { %p290_p5 = scmp.ne.s32.totalorder %s29_s20, %s289_s21  ;;  %p295_p7 = scmp.lt.s32.totalorder %s289_s21, %s289_s21 }
  0x13   :  { %p296_p8 = por %p295_p7, %p294_p6 }
  0x15   :  { %p297_p9 = pnand %p296_p8, %p290_p5 }
  0x17   :  { %300 = shalt.err (!%p297_p9)
}
  0x18   :  { %34 = dma.hbm_to_vmem [thread:$0]  %s388_s1, 2048, %s29_s20, [#allocation6], %s328_s15, %s328_s15, %s329_s16  }
  0x19   :  { %321 = dma.done.wait [#allocation3], 256  }
  0x1a   :  { %322 = vsyncadd [#allocation3], 4294967040 }
  0x1b   :  { %323 = dma.done.wait [#allocation6], 2048  }
  0x1c   :  { %324 = vsyncadd [#allocation6], 4294965248  ;;  %v364_v0 = vld [vmem:[#allocation2] sm:$0xff]  ;;  %v366_v1 = vld [vmem:[#allocation2 + $0x8] sm:$0xff]  ;;  %s331_s24 = smov [#allocation7]  }
  0x1d   :  { %v86_v2 = vld [vmem:[#allocation5 + $0x78] sm:$0xff]  ;;  %45 = vadd.xlane.f32.xlu0 %v364_v0  ;;  %v51_v3 = vmul.f32 %v364_v0, %v364_v0  ;;  %v85_v4 = vld [vmem:[#allocation5 + $0x70] sm:$0xff]  ;;  %v52_v5 = vmul.f32 %v366_v1, %v366_v1  ;;  %v84_v6 = vld [vmem:[#allocation5 + $0x68] sm:$0xff]  ;;  %s184_s25 = sshll.u32 %s331_s24, 4  ;;  %s185_s25 = int_to_ptr.vmem [resolvable:$true] %s184_s25 }
  0x1e   :  { %217 = vmatprep.subr.mxu0 %v86_v2  ;;  %v83_v7 = vld [vmem:[#allocation5 + $0x60] sm:$0xff]  ;;  %v82_v8 = vld [vmem:[#allocation5 + $0x58] sm:$0xff]  ;;  %v81_v9 = vld [vmem:[#allocation5 + $0x50] sm:$0xff]  ;;  %s301_s26 = scalar_lea.vmem %s185_s25, 256  ;;  %p306_p11 = scmp.lt.s32.totalorder %s185_s25, %s185_s25 }
  0x1f   :  { %218 = vmatpush3.msra.mxu0 %v86_v2  ;;  %53 = vadd.xlane.f32.xlu1 %v51_v3  ;;  %v80_v10 = vld [vmem:[#allocation5 + $0x48] sm:$0xff]  ;;  %v79_v11 = vld [vmem:[#allocation5 + $0x40] sm:$0xff]  ;;  %v78_v12 = vld [vmem:[#allocation5 + $0x38] sm:$0xff]  ;;  %p302_p10 = scmp.ne.s32.totalorder %s185_s25, %s301_s26  ;;  %p307_p12 = scmp.lt.s32.totalorder %s301_s26, %s301_s26 }
  0x20   :  { %219 = vmatprep.subr.mxu0 %v85_v4  ;;  %v77_v13 = vld [vmem:[#allocation5 + $0x30] sm:$0xff]  ;;  %v76_v14 = vld [vmem:[#allocation5 + $0x28] sm:$0xff]  ;;  %v75_v15 = vld [vmem:[#allocation5 + $0x20] sm:$0xff] }
  0x21   :  { %220 = vmatpush3.msra.mxu0 %v85_v4  ;;  %47 = vadd.xlane.f32.xlu0 %v366_v1  ;;  %v74_v16 = vld [vmem:[#allocation5 + $0x18] sm:$0xff]  ;;  %v73_v17 = vld [vmem:[#allocation5 + $0x10] sm:$0xff]  ;;  %v72_v18 = vld [vmem:[#allocation5 + $0x8] sm:$0xff]  ;;  %p308_p13 = por %p307_p12, %p306_p11 }
  0x22   :  { %221 = vmatprep.subr.mxu0 %v84_v6  ;;  %v71_v19 = vld [vmem:[#allocation5] sm:$0xff]  ;;  %v198_v40 = vld [vmem:[%s389_s2] ss:$0 sm:$0xff] }
  0x23   :  { %55 = vadd.xlane.f32.xlu1 %v52_v5  ;;  %222 = vmatpush3.msra.mxu0 %v84_v6  ;;  %p309_p0 = pnand %p308_p13, %p302_p10 }
  0x24   :  { %223 = vmatprep.subr.mxu0 %v83_v7 }
  0x25   :  { %224 = vmatpush3.msra.mxu0 %v83_v7 }
  0x26   :  { %225 = vmatprep.subr.mxu0 %v82_v8 }
  0x27   :  { %226 = vmatpush3.msra.mxu0 %v82_v8 }
  0x28   :  { %227 = vmatprep.subr.mxu0 %v81_v9 }
  0x29   :  { %228 = vmatpush3.msra.mxu0 %v81_v9 }
  0x2a   :  { %229 = vmatprep.subr.mxu0 %v80_v10 }
  0x2b   :  { %230 = vmatpush3.msra.mxu0 %v80_v10 }
  0x2c   :  { %231 = vmatprep.subr.mxu0 %v79_v11 }
  0x2d   :  { %232 = vmatpush3.msra.mxu0 %v79_v11 }
  0x2e   :  { %233 = vmatprep.subr.mxu0 %v78_v12 }
  0x2f   :  { %234 = vmatpush3.msra.mxu0 %v78_v12 }
  0x30   :  { %235 = vmatprep.subr.mxu0 %v77_v13 }
  0x31   :  { %236 = vmatpush3.msra.mxu0 %v77_v13 }
  0x32   :  { %237 = vmatprep.subr.mxu0 %v76_v14 }
  0x33   :  { %238 = vmatpush3.msra.mxu0 %v76_v14 }
  0x34   :  { %239 = vmatprep.subr.mxu0 %v75_v15 }
  0x35   :  { %240 = vmatpush3.msra.mxu0 %v75_v15 }
  0x36   :  { %241 = vmatprep.subr.mxu0 %v74_v16 }
  0x37   :  { %242 = vmatpush3.msra.mxu0 %v74_v16 }
  0x38   :  { %243 = vmatprep.subr.mxu0 %v73_v17 }
  0x39   :  { %244 = vmatpush3.msra.mxu0 %v73_v17 }
  0x3a   :  { %245 = vmatprep.subr.mxu0 %v72_v18 }
  0x3b   :  { %246 = vmatpush3.msra.mxu0 %v72_v18 }
  0x3c   :  { %247 = vmatprep.subr.mxu0 %v71_v19 }
  0x3d   :  { %248 = vmatpush3.msra.mxu0 %v71_v19 }
  0xa6   :  { %v46_v20 = vpop.xlane.xlu0 %45 }
  0xa7   :  { %v49_v21 = vmul.f32 0.03125, %v46_v20 }
  0xa8   :  { %v54_v22 = vpop.xlane.xlu1 %53 }
  0xa9   :  { %v59_v23 = vmul.f32 %v49_v21, %v49_v21  ;;  %v57_v24 = vmul.f32 0.03125, %v54_v22  ;;  %v63_v34 = vsub.f32 %v364_v0, %v49_v21 }
  0xaa   :  { %v48_v25 = vpop.xlane.xlu0 %47 }
  0xab   :  { %v61_v26 = vsub.f32 %v57_v24, %v59_v23  ;;  %v50_v27 = vmul.f32 0.03125, %v48_v25 }
  0xac   :  { %v56_v28 = vpop.xlane.xlu1 %55 }
  0xad   :  { %v65_v29 = vadd.f32 1e-05, %v61_v26  ;;  %v60_v30 = vmul.f32 %v50_v27, %v50_v27  ;;  %v58_v31 = vmul.f32 0.03125, %v56_v28  ;;  %v64_v37 = vsub.f32 %v366_v1, %v50_v27 }
  0xaf   :  { %257 = vrsqrt.f32 %v65_v29  ;;  %v62_v32 = vsub.f32 %v58_v31, %v60_v30 }
  0xb1   :  { %v66_v33 = vadd.f32 1e-05, %v62_v32 }
  0xb3   :  { %259 = vrsqrt.f32 %v66_v33 }
  0xbc   :  { %v258_v35 = vpop.eup %257 }
  0xbd   :  { %v69_v36 = vmul.f32 %v258_v35, %v63_v34 }
  0xbf   :  { %249 = vmatprep.mubr.f32.mxu0 %v69_v36 }
  0xc0   :  { %v260_v38 = vpop.eup %259 }
  0xc1   :  { %v70_v39 = vmul.f32 %v260_v38, %v64_v37 }
  0xc3   :  { %250 = vmatmul.mubr.f32.vlgmr.msra.gmra.mxu0 %v70_v39 }
 0x183   :  { %v251_v41 = vpop.f32.mrf.mxu0 }
 0x184   :  { %v166_v42 = vadd.f32 %v251_v41, %v198_v40 }
 0x185   :  { %v160_v43 = vpop.f32.mrf.mxu0 }
 0x186   :  { %v176_v44 = vadd.f32 %v166_v42, %v366_v1  ;;  %v161_v45 = vadd.f32 %v198_v40, %v160_v43 }
 0x188   :  { %178 = vst [vmem:[#allocation7 + $0x8] sm:$0xff] %v176_v44  ;;  %v175_v46 = vadd.f32 %v161_v45, %v364_v0 }
 0x18a   :  { %177 = vst [vmem:[#allocation7] sm:$0xff] %v175_v46 }
 0x18b   :  { %312 = shalt.err (!%p309_p0)
}
 0x18c   :  { %190 = dma.vmem_to_hbm [thread:$0]  %s185_s25, 256, %s390_s3, [#allocation4], %s328_s15, %s328_s15, %s329_s16  }
 0x18d   :  { %325 = dma.done.wait [#allocation4], 256  }
 0x18e   :  { %326 = vsyncadd [#allocation4], 4294967040 }
 0x18f   :  { %194 = vsyncpa [#allocation3], 1 }
 0x190   :  { %195 = vsyncpa [#allocation6], 1 }
 0x191   :  { %196 = vsyncpa [#allocation4], 1 }

</bundles_post_ra>
